<compile_context>
chip_gen: v7x
topology: tpu7x:2x2x1
jax: 0.10.0
libtpu: 0.0.40
codegen_flags: <defaults>
</compile_context>

<pallas_src>
import math
from typing import NamedTuple

import jax
import jax.numpy as jnp
from jax.experimental import pallas as pl
from jax.experimental.pallas import tpu as pltpu


# ---------------------------------------------------------------------------
# Kernel
# ---------------------------------------------------------------------------
def _ll_kernel(x_ref, w_ref, b_ref, o_ref):
    # x_ref: (TM, K) streamed; w_ref: (K, N) resident; b_ref: (1, N) resident.
    acc = jnp.dot(x_ref[...], w_ref[...], preferred_element_type=jnp.float32)
    o_ref[...] = (acc + b_ref[...]).astype(o_ref.dtype)


# ---------------------------------------------------------------------------
# Init-time parameter packing (hoisted out of the forward path)
# ---------------------------------------------------------------------------
class LLParams(NamedTuple):
    w_packed: jax.Array   # (P*in_size, P*out_size) = kron(I_P, W^T)
    b_packed: jax.Array   # (1, P*out_size)
    w_t: jax.Array        # (in_size, out_size)  -- XLA fast path
    bias: jax.Array       # (out_size,)          -- XLA fast path
    pack: int
    in_size: int
    out_size: int


def _pack_factor(in_size: int, out_size: int) -> int:
    """Smallest P such that P*in_size and P*out_size are multiples of 128
    (lane-dense loads AND stores), subject to the packed block-diagonal
    weight staying small.  Falls back to 1 (unpacked)."""
    def need(n):
        return 128 // math.gcd(128, n)
    a, b = need(in_size), need(out_size)
    p = a * b // math.gcd(a, b)
    if p > 1 and p * max(in_size, out_size) <= 512:
        return p
    return 1


def pack_ll_params(weight: jax.Array, bias: jax.Array) -> LLParams:
    """weight: (out_size, in_size) [PyTorch nn.Linear layout]; bias: (out_size,).
    Call once at model-init time; the result is reused across forward calls."""
    out_size, in_size = weight.shape
    assert bias.shape == (out_size,)
    w_t = weight.T  # (in_size, out_size)

    p = _pack_factor(in_size, out_size)
    if p > 1:
        w_packed = jnp.kron(jnp.eye(p, dtype=w_t.dtype), w_t)      # block-diag
        b_packed = jnp.tile(bias, p).reshape(1, p * out_size)
    else:
        w_packed = w_t
        b_packed = bias.reshape(1, out_size)
    return LLParams(w_packed, b_packed, w_t, bias, p, in_size, out_size)


# ---------------------------------------------------------------------------
# Tiling heuristics
# ---------------------------------------------------------------------------
_TM_MAX = 8192  # packed rows per grid step (~8 MiB x+out per step at K=N=128)


def _round_up(x: int, m: int) -> int:
    return ((x + m - 1) // m) * m


def _choose_tile(rows: int, tm_max: int = _TM_MAX) -> int:
    """Pick the batch tile: as large as possible (amortize ~0.35 us/step grid
    overhead) while keeping an EVEN number (>= 2) of grid steps for v7x's two
    TensorCores whenever the problem is big enough to split."""
    if rows <= 512:
        return rows  # single full block; overhead-dominated regardless
    steps = max(2, pl.cdiv(rows, tm_max))
    if steps % 2:
        steps += 1
    tm = _round_up(pl.cdiv(rows, steps), 8)
    return min(tm, rows)


# ---------------------------------------------------------------------------
# Forward
# ---------------------------------------------------------------------------
def ll_forward(x: jax.Array, params: LLParams, n_heads: int, n_features: int,
               *, min_pallas_rows: int = 256) -> jax.Array:
    """x: (batch, in_size). Returns (batch, n_heads, n_features) == x @ W^T + b."""
    batch, in_size = x.shape
    assert in_size == params.in_size
    out_size = n_heads * n_features
    assert out_size == params.out_size

    P = params.pack
    rows = pl.cdiv(batch, P)

    # Small-batch fast path: a single fused XLA op beats the custom-call
    # launch overhead for tiny inputs.
    if rows < min_pallas_rows:
        out = x @ params.w_t + params.bias
        return out.reshape(batch, n_heads, n_features)

    # Zero-pad the batch to a multiple of P so the lane-dense packed path is
    # used for arbitrary batch sizes (padding rows are sliced off afterwards).
    padded_batch = rows * P
    if padded_batch != batch:
        x = jnp.pad(x, ((0, padded_batch - batch), (0, 0)))
    x_k = x.reshape(rows, P * in_size)

    k_dim = params.w_packed.shape[0]
    n_dim = params.w_packed.shape[1]

    TM = _choose_tile(rows)
    grid = (pl.cdiv(rows, TM),)

    # Explicit scoped-VMEM budget: double-buffered x + out tiles plus the
    # resident weight/bias, with headroom.  Keeps TM=8192 legal on v5e
    # (16 MiB default limit) and well inside v7x's 64 MiB physical VMEM.
    itemsize = 4  # f32
    footprint = (2 * TM * (k_dim + n_dim) * itemsize
                 + 2 * (k_dim * n_dim + n_dim) * itemsize)
    vmem_limit = int(min(48 * 1024 * 1024, footprint + 4 * 1024 * 1024))

    out = pl.pallas_call(
        _ll_kernel,
        out_shape=jax.ShapeDtypeStruct((rows, n_dim), x.dtype),
        grid=grid,
        in_specs=[
            pl.BlockSpec((TM, k_dim), lambda i: (i, 0)),     # x: streams over batch
            pl.BlockSpec((k_dim, n_dim), lambda i: (0, 0)),  # weight: resident
            pl.BlockSpec((1, n_dim), lambda i: (0, 0)),      # bias: resident
        ],
        out_specs=pl.BlockSpec((TM, n_dim), lambda i: (i, 0)),
        compiler_params=pltpu.CompilerParams(
            # Batch axis is embarrassingly parallel -> megacore on v7x.
            dimension_semantics=("parallel",),
            vmem_limit_bytes=vmem_limit,
        ),
    )(x_k, params.w_packed, params.b_packed)

    # Row-major packed output == (padded_batch, out_size); slice off padding.
    # nn.Flatten is a no-op for 2-D input; the head reshape is pure metadata.
    out = out.reshape(padded_batch, out_size)[:batch]
    return out.reshape(batch, n_heads, n_features)


# TODO(synk): bf16 streaming of x / output (f32 accumulate) would roughly halve
# HBM bytes on this memory-bound op but needs validation against the emulator's
# accuracy requirements, so it is left in f32 here.


# ---------------------------------------------------------------------------
# Demo / self-test
# ---------------------------------------------------------------------------
if __name__ == "__main__":
    # Shapes consistent with the module: in_size=32, n_heads=4, n_features=8.
    in_size, n_heads, n_features = 32, 4, 8
    out_size = n_heads * n_features

    key = jax.random.PRNGKey(0)
    kx1, kx2, kx3, kw, kb = jax.random.split(key, 5)

    # Deterministic param init mimicking nn.Linear: uniform(-1/sqrt(in), 1/sqrt(in)).
    bound = 1.0 / (in_size ** 0.5)
    weight = jax.random.uniform(kw, (out_size, in_size), jnp.float32, -bound, bound)
    bias = jax.random.uniform(kb, (out_size,), jnp.float32, -bound, bound)

    # Init-time packing (hoisted out of the per-call path).
    params = pack_ll_params(weight, bias)

    def ref(xx):
        return (xx @ weight.T + bias).reshape(xx.shape[0], n_heads, n_features)

    # 1) Batch large enough for the Pallas path: packed lane-dense kernel,
    #    even 2-step grid (rows=2048 -> TM=1024).
    x1 = jax.random.normal(kx1, (8192, in_size), dtype=jnp.float32)
    o1 = jax.block_until_ready(ll_forward(x1, params, n_heads, n_features))
    assert o1.shape == (8192, n_heads, n_features)
    assert jnp.allclose(o1, ref(x1), atol=1e-5, rtol=1e-5)

    # 2) Odd small batch forced through the kernel: exercises the zero-pad
    #    (batch 6 -> 8) + output-slice path.
    x2 = jax.random.normal(kx2, (6, in_size), dtype=jnp.float32)
    o2 = jax.block_until_ready(
        ll_forward(x2, params, n_heads, n_features, min_pallas_rows=0))
    assert o2.shape == (6, n_heads, n_features)
    assert jnp.allclose(o2, ref(x2), atol=1e-5, rtol=1e-5)

    # 3) Tiny batch, default settings: XLA fast path.
    x3 = jax.random.normal(kx3, (8, in_size), dtype=jnp.float32)
    o3 = jax.block_until_ready(ll_forward(x3, params, n_heads, n_features))
    assert o3.shape == (8, n_heads, n_features)
    assert jnp.allclose(o3, ref(x3), atol=1e-5, rtol=1e-5)

    print("KERNEL_OK")
</pallas_src>

<mosaic_0001>
module attributes {stable_mosaic.version = 11 : i64} {
  func.func @_ll_kernel(%arg0: i32, %arg1: memref<1024x128xf32, #tpu.memory_space<vmem>>, %arg2: memref<128x128xf32, #tpu.memory_space<vmem>>, %arg3: memref<1x128xf32, #tpu.memory_space<vmem>>, %arg4: memref<1024x128xf32, #tpu.memory_space<vmem>>) attributes {dimension_semantics = [#tpu.dimension_semantics<parallel>], iteration_bounds = array<i64: 2>, scalar_prefetch = 0 : i64, scratch_operands = 0 : i64, tpu.core_type = #tpu.core_type<tc>, window_params = [{transform_indices = @transform_0, window_bounds = array<i64: 1024, 128>}, {pipeline_mode = #tpu.pipeline_mode<synchronous>, transform_indices = @transform_1, window_bounds = array<i64: 128, 128>}, {pipeline_mode = #tpu.pipeline_mode<synchronous>, transform_indices = @transform_2, window_bounds = array<i64: 1, 128>}, {transform_indices = @transform_3, window_bounds = array<i64: 1024, 128>}]} {
    %c0 = arith.constant 0 : index
    %c0_0 = arith.constant 0 : index
    %0 = vector.load %arg1[%c0, %c0_0] : memref<1024x128xf32, #tpu.memory_space<vmem>>, vector<1024x128xf32>
    %c0_1 = arith.constant 0 : index
    %c0_2 = arith.constant 0 : index
    %1 = vector.load %arg2[%c0_1, %c0_2] : memref<128x128xf32, #tpu.memory_space<vmem>>, vector<128x128xf32>
    %cst = arith.constant dense<0.000000e+00> : vector<1024x128xf32>
    %2 = tpu.matmul %0, %1, %cst {dimension_numbers = #tpu.dot_dimension_numbers<[1], [0], [0], [1], [0, 0, 1, 1], [], []>} : vector<1024x128xf32>, vector<128x128xf32>, vector<1024x128xf32> -> vector<1024x128xf32>
    %c0_3 = arith.constant 0 : index
    %c0_4 = arith.constant 0 : index
    %3 = vector.load %arg3[%c0_3, %c0_4] : memref<1x128xf32, #tpu.memory_space<vmem>>, vector<1x128xf32>
    %4 = vector.broadcast %3 : vector<1x128xf32> to vector<1024x128xf32>
    %5 = arith.addf %2, %4 : vector<1024x128xf32>
    %c0_5 = arith.constant 0 : index
    %c0_6 = arith.constant 0 : index
    %6 = vector.load %arg4[%c0_5, %c0_6] : memref<1024x128xf32, #tpu.memory_space<vmem>>, vector<1024x128xf32>
    tpu.vector_store %arg4[%c0_5, %c0_6], %5 {strides = array<i32>} : memref<1024x128xf32, #tpu.memory_space<vmem>>, vector<1024x128xf32>,
    return
  }
  func.func @transform_0(%arg0: i32) -> (i32, i32) {
    %c0_i32 = arith.constant 0 : i32
    %c0_i32_0 = arith.constant 0 : i32
    return %arg0, %c0_i32 : i32, i32
  }
  func.func @transform_1(%arg0: i32) -> (i32, i32) {
    %c0_i32 = arith.constant 0 : i32
    %c0_i32_0 = arith.constant 0 : i32
    %c0_i32_1 = arith.constant 0 : i32
    return %c0_i32, %c0_i32_0 : i32, i32
  }
  func.func @transform_2(%arg0: i32) -> (i32, i32) {
    %c0_i32 = arith.constant 0 : i32
    %c0_i32_0 = arith.constant 0 : i32
    %c0_i32_1 = arith.constant 0 : i32
    return %c0_i32, %c0_i32_0 : i32, i32
  }
  func.func @transform_3(%arg0: i32) -> (i32, i32) {
    %c0_i32 = arith.constant 0 : i32
    %c0_i32_0 = arith.constant 0 : i32
    return %arg0, %c0_i32 : i32, i32
  }
}

</mosaic_0001>

<bundles_post_ra>
// kernel: tpu_custom_call.1
= control target key start
LH: loop header
LB: loop body
LE: loop exit
PB: predicated region body
PF: predicated region fallthrough
CT: control target
= control target key end

     0   :  { %8 = vsyncpa [#allocation3], 0  ;;  %s2545_s0 = inlined_call_operand.hbm [shape: f32[2048,128], index: 0, kind: input, shape index: {}]   ;;  %s2546_s1 = inlined_call_operand.hbm [shape: f32[128,128], index: 1, kind: input, shape index: {}]   ;;  %s2547_s2 = inlined_call_operand.vmem [shape: f32[1,128], index: 2, kind: input, shape index: {}]   ;;  %s2548_s3 = inlined_call_operand.hbm [shape: f32[2048,128], index: 3, kind: output, shape index: {}]  }
   0x1   :  { %10 = vsyncpa [#allocation3 + $0x1], 0 }
   0x2   :  { %11 = vsyncpa [#allocation6], 0 }
   0x3   :  { %12 = vsyncpa [#allocation4], 0 }
   0x4   :  { %14 = vsyncpa [#allocation4 + $0x1], 0  ;;  %s1940_s12 = smov 0   ;;  %s1942_s13 = smov 0  }
   0x5   :  { %s1944_s14 = smov 0   ;;  %s1946_s15 = smov 0  }
   0x6 LB: > { %s1961_s16 = sadd.s32 4294967295, %s1911_s15   ;;  %s1287_s17 = sadd.s32 4294967294, %s1911_s15   ;;  %s1911_s15 = sphi %s1946_s15, %s2568_s15   ;;  %s1907_s14 = sphi %s1944_s14, %s2567_s14   ;;  %s1903_s13 = sphi %s1942_s13, %s2566_s13   ;;  %s1899_s12 = sphi %s1940_s12, %s2565_s12  }
   0x7   : > { %p40_p0 = scmp.ne.s32.totalorder %s1903_s13, %s1899_s12  ;;  %p2549_p1 = scmp.eq.s32.totalorder %s1961_s16, 0 }
   0x8   : > { %p112_p3 = scmp.eq.s32.totalorder %s1287_s17, 1  ;;  %p1288_p5 = scmp.ge.s32.totalorder %s1911_s15, 1 }
   0x9   : > { %p1970_p4 = por %p2549_p1, %p40_p0  ;;  %p119_p7 = scmp.lt.s32.totalorder %s1911_s15, 3 }
   0xa   : > { %p1975_p6 = por %p112_p3, %p40_p0  ;;  %s1913_s21 = smov [#allocation5]  }
   0xb   : > { %s2552_s18 = scalar_select %p1970_p4, 1, 0 }
   0xc   : > { %s2553_s19 = scalar_select %p1975_p6, 1, 0 }
   0xd   : > { %p1980_p8 = pnand %p1288_p5, %p119_p7  ;;  %s131_s22 = sshll.u32 %s1913_s21, 4  ;;  %s1984_s22 = int_to_ptr.vmem [resolvable:$true] %s131_s22 }
   0xe   : > { %s1996_s24 = sadd.s32 1, %s1911_s15   ;;  %s27_s25 = sadd.s32 1, %s1907_s14 }
   0xf   : > { %s2554_s20 = scalar_select %p1980_p8, 1, 0 }
  0x10   : > { %p1730_p9 = pneg %p1980_p8  ;;  %s24_s26 = ssub.s32 %s1911_s15, %s1996_s24 }
  0x11   : > { %s1783_s29 = scalar_lea.hbm %s2546_s1, 2048 }
  0x12   : > { %p1991_p11 = pnand %p1730_p9, %p2549_p1  ;;  %p1784_p12 = scmp.ne.s32.totalorder %s2546_s1, %s1783_s29 }
  0x13   : > { %p1790_p5 = scmp.lt.u32.totalorder %s1783_s29, %s2546_s1 }
  0x14   : > { %p1785_p13 = pneg %p1991_p11 }
  0x16   : > { %p1786_p0 = pnand %p1785_p13, %p1784_p12 }
  0x18   : > { %p1787_p3 = pneg %p1786_p0 }
  0x1a   : > { %p1792_p7 = pnand %p1790_p5, %p1787_p3 }
  0x1c   : > { %1795 = shalt.err (!%p1792_p7)
}
  0x1d   : > { %s1796_s7 = scalar_lea.vmem %s1984_s22, 2048  ;;  %p1804_p2 = scmp.lt.s32.totalorder %s1984_s22, %s1984_s22 }
  0x1e   : > { %p1797_p9 = scmp.ne.s32.totalorder %s1984_s22, %s1796_s7  ;;  %p1805_p6 = scmp.lt.s32.totalorder %s1796_s7, %s1796_s7 }
  0x20   : > { %p1799_p10 = pnand %p1797_p9, %p1785_p13  ;;  %p1806_p4 = por %p1805_p6, %p1804_p2 }
  0x22   : > { %p1800_p1 = pneg %p1799_p10 }
  0x24   : > { %p1807_p8 = pnand %p1806_p4, %p1800_p1 }
  0x26   : > { %1810 = shalt.err (!%p1807_p8)
}
  0x27   : > { %s1914_s8 = smov 128   ;;  %s1915_s9 = smov 8  }
  0x28   : > { %1733 = dma.hbm_to_vmem [thread:$0]  (!%p1991_p11), %s2546_s1, 2048, %s1984_s22, [#allocation6], %s1914_s8, %s1914_s8, %s1915_s9  }
  0x29   : > { %p25_p1 = scmp.eq.s32.totalorder %s24_s26, 0  ;;  %p34_p2 = scmp.ne.s32.totalorder %s1907_s14, %s1903_s13 }
  0x2a   : > { %p35_p4 = scmp.eq.s32.totalorder %s1911_s15, 0  ;;  %p1743_p6 = scmp.lt.s32.totalorder %s1911_s15, 2 }
  0x2b   : > { %s2030_s17 = scalar_select %p25_p1, %s1907_s14, %s27_s25  }
  0x2c   : > { %p36_p8 = por %p35_p4, %p34_p2  ;;  %p2556_p10 = scmp.eq.s32.totalorder %s1961_s16, 1 }
  0x2d   : > { %s148_s23 = sand.u32 1, %s1907_s14   ;;  %s1304_s27 = sshll.u32 %s1911_s15, 14 }
  0x2e   : > { %p2034_p12 = por %p2556_p10, %p34_p2  ;;  %s1291_s28 = sshll.u32 %s148_s23, 10 }
  0x2f   : > { %s2043_s4 = scalar_lea.hbm %s2545_s0, %s1304_s27  ;;  %s152_s22 = scalar_lea.vmem [#allocation2], %s1291_s28 }
  0x30   : > { %s159_s25 = sshll.u32 %s152_s22, 4  ;;  %p2045_p11 = pnand %p1743_p6, %p36_p8  ;;  %s2049_s25 = int_to_ptr.vmem [resolvable:$true] %s159_s25 }
  0x31   : > { %s2051_s5 = scalar_lea.sflag [#allocation3], %s148_s23  ;;  %s1811_s6 = scalar_lea.hbm %s2043_s4, 16384 }
  0x32   : > { %p1812_p13 = scmp.ne.s32.totalorder %s2043_s4, %s1811_s6  ;;  %p1813_p0 = pneg %p2045_p11 }
  0x33   : > { %s1816_s11 = scalar_lea.hbm %s2545_s0, 32768  ;;  %p1817_p7 = scmp.lt.u32.totalorder %s2043_s4, %s2545_s0 }
  0x34   : > { %p1814_p3 = pnand %p1813_p0, %p1812_p13  ;;  %p1818_p9 = scmp.lt.u32.totalorder %s1816_s11, %s1811_s6 }
  0x35   : > { %p1820_p2 = scmp.lt.u32.totalorder %s1811_s6, %s2043_s4 }
  0x36   : > { %p1815_p5 = pneg %p1814_p3  ;;  %p1819_p1 = por %p1818_p9, %p1817_p7 }
  0x38   : > { %p1821_p4 = por %p1820_p2, %p1819_p1 }
  0x3a   : > { %p1822_p6 = pnand %p1821_p4, %p1815_p5 }
  0x3c   : > { %1825 = shalt.err (!%p1822_p6)
}
  0x3d   : > { %s1826_s23 = scalar_lea.vmem %s2049_s25, 16384  ;;  %s1916_s29 = smov [#allocation2]  }
  0x3e   : > { %p1827_p8 = scmp.ne.s32.totalorder %s2049_s25, %s1826_s23  ;;  %s1831_s30 = sshll.u32 %s1916_s29, 4  ;;  %s1832_s30 = int_to_ptr.vmem [resolvable:$false] %s1831_s30 }
  0x3f   : > { %s1833_s22 = scalar_lea.vmem %s1832_s30, 32768  ;;  %p1834_p3 = scmp.lt.s32.totalorder %s2049_s25, %s1832_s30 }
  0x40   : > { %p1829_p10 = pnand %p1827_p8, %p1813_p0  ;;  %p1835_p7 = scmp.lt.s32.totalorder %s1833_s22, %s1826_s23 }
  0x42   : > { %p1830_p13 = pneg %p1829_p10  ;;  %p1836_p9 = por %p1835_p7, %p1834_p3 }
  0x44   : > { %p1837_p1 = pnand %p1836_p9, %p1830_p13 }
  0x46   : > { %1840 = shalt.err (!%p1837_p1)
}
  0x47   : > { %1737 = dma.hbm_to_vmem [thread:$0]  (!%p2045_p11), %s2043_s4, 16384, %s2049_s25, %s2051_s5, %s1914_s8, %s1914_s8, %s1915_s9  }
  0x48   : > { %p2559_p0 = scmp.ne.s32.totalorder %s2554_s20, 0 }
  0x49   : > { %s2085_s6 = sand.u32 (!%p2559_p0), 1, %s1903_s13   ;;  %p2560_p5 = scmp.ne.s32.totalorder (!%p2559_p0), %s2552_s18, 0 }
  0x4a   : > { %171 = sbr.rel (%p2559_p0) target bundleno = 474 (0x1da), region = 32  ;;  %s1295_s7 = sshll.u32 (!%p2559_p0), %s2085_s6, 10 }
  0x4b   : > { %s174_s10 = scalar_lea.sflag (!%p2559_p0), [#allocation3], %s2085_s6  ;;  %s2091_s26 = scalar_lea.vmem (!%p2559_p0), [#allocation2], %s1295_s7 }
  0x51   : > { %1886 = dma.done.wait (%p2560_p5), %s174_s10, 16384  }
  0x52   : > { %1888 = vsyncadd (%p2560_p5), %s174_s10, 4294950912  ;;  %p2561_p11 = scmp.eq.s32.totalorder %s1961_s16, 0 }
  0x54   : > { %1890 = dma.done.wait (%p2561_p11), [#allocation6], 2048   ;;  %p2562_p2 = pmov %p2561_p11 }
  0x55   : > { %v334_v0 = vld [vmem:[#allocation5] sm:$0xff]  ;;  %v335_v1 = vld [vmem:[#allocation5 + $0x8] sm:$0xff]  ;;  %v336_v2 = vld [vmem:[#allocation5 + $0x10] sm:$0xff]  ;;  %s2240_s8 = scalar_lea.vmem [#allocation7], %s1295_s7  ;;  %s1305_s9 = sshll.u32 %s1961_s16, 14 }
  0x56   : > { %1892 = vsyncadd (%p2562_p2), [#allocation6], 4294965248  ;;  %v1674_v3 = vpack.c.bf16 %v335_v1, %v334_v0  ;;  %v337_v4 = vld [vmem:[#allocation5 + $0x18] sm:$0xff]  ;;  %v338_v6 = vld [vmem:[#allocation5 + $0x20] sm:$0xff]  ;;  %s1204_s4 = sshll.u32 %s2240_s8, 4  ;;  %s2493_s5 = scalar_lea.hbm %s2548_s3, %s1305_s9  ;;  %s2495_s4 = int_to_ptr.vmem [resolvable:$true] %s1204_s4 }
  0x57   : > { %v1678_v5 = vpack.c.bf16 %v337_v4, %v336_v2  ;;  %v339_v7 = vld [vmem:[#allocation5 + $0x28] sm:$0xff]  ;;  %v206_v9 = vld [vmem:[%s2091_s26] sm:$0xff]  ;;  %v340_v11 = vld [vmem:[#allocation5 + $0x30] sm:$0xff]  ;;  %s1191_s11 = scalar_lea.sflag [#allocation4], %s2085_s6  ;;  %s1841_s27 = scalar_lea.vmem %s2495_s4, 16384 }
  0x58   : > { %1675 = vmatprep.subr.bf16.mxu0 %v1674_v3  ;;  %1706 = vmatprep.subr.bf16.mxu1 %v1674_v3  ;;  %v1682_v8 = vpack.c.bf16 %v339_v7, %v338_v6  ;;  %v270_v10 = vld [vmem:[%s2091_s26 + $0x200] sm:$0xff]  ;;  %v341_v12 = vld [vmem:[#allocation5 + $0x38] sm:$0xff]  ;;  %v343_v15 = vld [vmem:[#allocation5 + $0x48] sm:$0xff]  ;;  %p1842_p4 = scmp.ne.s32.totalorder %s2495_s4, %s1841_s27  ;;  %s1917_s28 = smov [#allocation7]  }
  0x59   : > { %1677 = vmatpush3.bf16.msra.mxu0 %v1674_v3  ;;  %1714 = vmatpush3.bf16.msra.mxu1 %v1674_v3  ;;  %v1686_v13 = vpack.c.bf16 %v341_v12, %v340_v11  ;;  %v342_v14 = vld [vmem:[#allocation5 + $0x40] sm:$0xff]  ;;  %v344_v17 = vld [vmem:[#allocation5 + $0x50] sm:$0xff]  ;;  %v345_v18 = vld [vmem:[#allocation5 + $0x58] sm:$0xff]  ;;  %s1845_s23 = sshll.u32 %s1917_s28, 4  ;;  %s1846_s23 = int_to_ptr.vmem [resolvable:$false] %s1845_s23 }
  0x5a   : > { %1679 = vmatprep.subr.bf16.mxu0 %v1678_v5  ;;  %1707 = vmatprep.subr.bf16.mxu1 %v1678_v5  ;;  %v1690_v16 = vpack.c.bf16 %v343_v15, %v342_v14  ;;  %v1694_v19 = vpack.c.bf16 %v345_v18, %v344_v17  ;;  %v346_v20 = vld [vmem:[#allocation5 + $0x60] sm:$0xff]  ;;  %v347_v21 = vld [vmem:[#allocation5 + $0x68] sm:$0xff]  ;;  %v348_v23 = vld [vmem:[#allocation5 + $0x70] sm:$0xff]  ;;  %p1843_p6 = pnand %p1842_p4, %p2034_p12  ;;  %s1847_s29 = scalar_lea.vmem %s1846_s23, 32768 }
  0x5b   : > { %1482 = vmatprep.mubr.f32.mxu0 %v206_v9  ;;  %1578 = vmatprep.mubr.f32.mxu1 %v270_v10  ;;  %v1698_v22 = vpack.c.bf16 %v347_v21, %v346_v20  ;;  %v349_v24 = vld [vmem:[#allocation5 + $0x78] sm:$0xff]  ;;  %v207_v26 = vld [vmem:[%s2091_s26 + $0x8] sm:$0xff]  ;;  %v208_v28 = vld [vmem:[%s2091_s26 + $0x10] sm:$0xff]  ;;  %p1848_p10 = scmp.lt.s32.totalorder %s2495_s4, %s1846_s23  ;;  %p1849_p13 = scmp.lt.s32.totalorder %s1847_s29, %s1841_s27 }
  0x5c   : > { %v1702_v25 = vpack.c.bf16 %v349_v24, %v348_v23  ;;  %v271_v27 = vld [vmem:[%s2091_s26 + $0x208] sm:$0xff]  ;;  %v272_v29 = vld [vmem:[%s2091_s26 + $0x210] sm:$0xff]  ;;  %v209_v30 = vld [vmem:[%s2091_s26 + $0x18] sm:$0xff]  ;;  %p1844_p8 = pneg %p1843_p6 }
  0x5d   : > { %1681 = vmatpush3.bf16.msra.mxu0 %v1678_v5  ;;  %1715 = vmatpush3.bf16.msra.mxu1 %v1678_v5  ;;  %v273_v31 = vld [vmem:[%s2091_s26 + $0x218] sm:$0xff]  ;;  %v210_v32 = vld [vmem:[%s2091_s26 + $0x20] sm:$0xff]  ;;  %v211_v34 = vld [vmem:[%s2091_s26 + $0x28] sm:$0xff]  ;;  %p1850_p3 = por %p1849_p13, %p1848_p10 }
  0x5e   : > { %1683 = vmatprep.subr.bf16.mxu0 %v1682_v8  ;;  %1708 = vmatprep.subr.bf16.mxu1 %v1682_v8  ;;  %v274_v33 = vld [vmem:[%s2091_s26 + $0x220] sm:$0xff]  ;;  %v275_v35 = vld [vmem:[%s2091_s26 + $0x228] sm:$0xff]  ;;  %v212_v36 = vld [vmem:[%s2091_s26 + $0x30] sm:$0xff] }
  0x5f   : > { %v276_v37 = vld [vmem:[%s2091_s26 + $0x230] sm:$0xff]  ;;  %v213_v38 = vld [vmem:[%s2091_s26 + $0x38] sm:$0xff]  ;;  %v214_v40 = vld [vmem:[%s2091_s26 + $0x40] sm:$0xff]  ;;  %p1851_p7 = pnand %p1850_p3, %p1844_p8 }
  0x60   : > { %v277_v39 = vld [vmem:[%s2091_s26 + $0x238] sm:$0xff]  ;;  %v278_v41 = vld [vmem:[%s2091_s26 + $0x240] sm:$0xff]  ;;  %v215_v42 = vld [vmem:[%s2091_s26 + $0x48] sm:$0xff] }
  0x61   : > { %1685 = vmatpush3.bf16.msra.mxu0 %v1682_v8  ;;  %1716 = vmatpush3.bf16.msra.mxu1 %v1682_v8  ;;  %v279_v43 = vld [vmem:[%s2091_s26 + $0x248] sm:$0xff]  ;;  %v216_v44 = vld [vmem:[%s2091_s26 + $0x50] sm:$0xff]  ;;  %v217_v46 = vld [vmem:[%s2091_s26 + $0x58] sm:$0xff] }
  0x62   : > { %1687 = vmatprep.subr.bf16.mxu0 %v1686_v13  ;;  %1709 = vmatprep.subr.bf16.mxu1 %v1686_v13  ;;  %v280_v45 = vld [vmem:[%s2091_s26 + $0x250] sm:$0xff]  ;;  %v281_v47 = vld [vmem:[%s2091_s26 + $0x258] sm:$0xff]  ;;  %v218_v48 = vld [vmem:[%s2091_s26 + $0x60] sm:$0xff] }
  0x63   : > { %v282_v49 = vld [vmem:[%s2091_s26 + $0x260] sm:$0xff]  ;;  %v219_v50 = vld [vmem:[%s2091_s26 + $0x68] sm:$0xff]  ;;  %v220_v52 = vld [vmem:[%s2091_s26 + $0x70] sm:$0xff] }
  0x64   : > { %v283_v51 = vld [vmem:[%s2091_s26 + $0x268] sm:$0xff]  ;;  %v284_v53 = vld [vmem:[%s2091_s26 + $0x270] sm:$0xff]  ;;  %v221_v54 = vld [vmem:[%s2091_s26 + $0x78] sm:$0xff] }
  0x65   : > { %1689 = vmatpush3.bf16.msra.mxu0 %v1686_v13  ;;  %1717 = vmatpush3.bf16.msra.mxu1 %v1686_v13  ;;  %v285_v55 = vld [vmem:[%s2091_s26 + $0x278] sm:$0xff]  ;;  %v222_v56 = vld [vmem:[%s2091_s26 + $0x80] sm:$0xff]  ;;  %v223_v58 = vld [vmem:[%s2091_s26 + $0x88] sm:$0xff] }
  0x66   : > { %1691 = vmatprep.subr.bf16.mxu0 %v1690_v16  ;;  %1710 = vmatprep.subr.bf16.mxu1 %v1690_v16  ;;  %v286_v57 = vld [vmem:[%s2091_s26 + $0x280] sm:$0xff]  ;;  %v287_v59 = vld [vmem:[%s2091_s26 + $0x288] sm:$0xff]  ;;  %v224_v60 = vld [vmem:[%s2091_s26 + $0x90] sm:$0xff] }
  0x67   : > { %v288_v61 = vld [vmem:[%s2091_s26 + $0x290] sm:$0xff]  ;;  %v225_v62 = vld [vmem:[%s2091_s26 + $0x98] sm:$0xff]  ;;  %v226_v0 = vld [vmem:[%s2091_s26 + $0xa0] sm:$0xff] }
  0x68   : > { %v289_v63 = vld [vmem:[%s2091_s26 + $0x298] sm:$0xff]  ;;  %v290_v1 = vld [vmem:[%s2091_s26 + $0x2a0] sm:$0xff]  ;;  %v227_v2 = vld [vmem:[%s2091_s26 + $0xa8] sm:$0xff] }
  0x69   : > { %1693 = vmatpush3.bf16.msra.mxu0 %v1690_v16  ;;  %1718 = vmatpush3.bf16.msra.mxu1 %v1690_v16  ;;  %v291_v3 = vld [vmem:[%s2091_s26 + $0x2a8] sm:$0xff]  ;;  %v228_v4 = vld [vmem:[%s2091_s26 + $0xb0] sm:$0xff]  ;;  %v229_v6 = vld [vmem:[%s2091_s26 + $0xb8] sm:$0xff] }
  0x6a   : > { %1695 = vmatprep.subr.bf16.mxu0 %v1694_v19  ;;  %1711 = vmatprep.subr.bf16.mxu1 %v1694_v19  ;;  %v292_v5 = vld [vmem:[%s2091_s26 + $0x2b0] sm:$0xff]  ;;  %v293_v7 = vld [vmem:[%s2091_s26 + $0x2b8] sm:$0xff]  ;;  %v230_v8 = vld [vmem:[%s2091_s26 + $0xc0] sm:$0xff] }
  0x6b   : > { %v294_v9 = vld [vmem:[%s2091_s26 + $0x2c0] sm:$0xff]  ;;  %v231_v10 = vld [vmem:[%s2091_s26 + $0xc8] sm:$0xff]  ;;  %v232_v12 = vld [vmem:[%s2091_s26 + $0xd0] sm:$0xff] }
  0x6c   : > { %v295_v11 = vld [vmem:[%s2091_s26 + $0x2c8] sm:$0xff]  ;;  %v296_v13 = vld [vmem:[%s2091_s26 + $0x2d0] sm:$0xff]  ;;  %v233_v14 = vld [vmem:[%s2091_s26 + $0xd8] sm:$0xff] }
  0x6d   : > { %1697 = vmatpush3.bf16.msra.mxu0 %v1694_v19  ;;  %1719 = vmatpush3.bf16.msra.mxu1 %v1694_v19  ;;  %v297_v15 = vld [vmem:[%s2091_s26 + $0x2d8] sm:$0xff]  ;;  %v234_v16 = vld [vmem:[%s2091_s26 + $0xe0] sm:$0xff]  ;;  %v235_v18 = vld [vmem:[%s2091_s26 + $0xe8] sm:$0xff] }
  0x6e   : > { %1699 = vmatprep.subr.bf16.mxu0 %v1698_v22  ;;  %1712 = vmatprep.subr.bf16.mxu1 %v1698_v22  ;;  %v298_v17 = vld [vmem:[%s2091_s26 + $0x2e0] sm:$0xff]  ;;  %v299_v19 = vld [vmem:[%s2091_s26 + $0x2e8] sm:$0xff]  ;;  %v236_v20 = vld [vmem:[%s2091_s26 + $0xf0] sm:$0xff] }
  0x6f   : > { %v300_v21 = vld [vmem:[%s2091_s26 + $0x2f0] sm:$0xff]  ;;  %v301_v23 = vld [vmem:[%s2091_s26 + $0x2f8] sm:$0xff]  ;;  %v238_v24 = vld [vmem:[%s2091_s26 + $0x100] sm:$0xff] }
  0x71   : > { %1701 = vmatpush3.bf16.msra.mxu0 %v1698_v22  ;;  %1720 = vmatpush3.bf16.msra.mxu1 %v1698_v22  ;;  %v237_v22 = vld [vmem:[%s2091_s26 + $0xf8] sm:$0xff] }
  0x72   : > { %1703 = vmatprep.subr.bf16.mxu0 %v1702_v25  ;;  %1713 = vmatprep.subr.bf16.mxu1 %v1702_v25 }
  0x75   : > { %1705 = vmatpush3.bf16.msra.mxu0 %v1702_v25  ;;  %1721 = vmatpush3.bf16.msra.mxu1 %v1702_v25  ;;  %v302_v25 = vld [vmem:[%s2091_s26 + $0x300] sm:$0xff] }
  0x78   : > { %1483 = vmatmul.mubr.f32.vlgmr.msra.gmra.mrb[0].mxu0 %v207_v26  ;;  %1579 = vmatmul.mubr.f32.vlgmr.msra.gmra.mrb[0].mxu1 %v271_v27  ;;  %v239_v26 = vld [vmem:[%s2091_s26 + $0x108] sm:$0xff] }
  0x79   : > { %1485 = vmatprep.mubr.f32.mxu0 %v208_v28  ;;  %1581 = vmatprep.mubr.f32.mxu1 %v272_v29  ;;  %v303_v27 = vld [vmem:[%s2091_s26 + $0x308] sm:$0xff]  ;;  %v240_v28 = vld [vmem:[%s2091_s26 + $0x110] sm:$0xff] }
  0x7a   : > { %v304_v29 = vld [vmem:[%s2091_s26 + $0x310] sm:$0xff] }
  0x7c   : > { %1486 = vmatmul.mubr.f32.gmra.mrb[2].mxu0 %v209_v30  ;;  %1582 = vmatmul.mubr.f32.gmra.mrb[2].mxu1 %v273_v31  ;;  %v241_v30 = vld [vmem:[%s2091_s26 + $0x118] sm:$0xff] }
  0x7d   : > { %1488 = vmatprep.mubr.f32.mxu0 %v210_v32  ;;  %1584 = vmatprep.mubr.f32.mxu1 %v274_v33  ;;  %v305_v31 = vld [vmem:[%s2091_s26 + $0x318] sm:$0xff]  ;;  %v242_v32 = vld [vmem:[%s2091_s26 + $0x120] sm:$0xff] }
  0x7e   : > { %v306_v33 = vld [vmem:[%s2091_s26 + $0x320] sm:$0xff] }
  0x80   : > { %1489 = vmatmul.mubr.f32.gmra.mrb[4].mxu0 %v211_v34  ;;  %1585 = vmatmul.mubr.f32.gmra.mrb[4].mxu1 %v275_v35  ;;  %v243_v34 = vld [vmem:[%s2091_s26 + $0x128] sm:$0xff] }
  0x81   : > { %1491 = vmatprep.mubr.f32.mxu0 %v212_v36  ;;  %1587 = vmatprep.mubr.f32.mxu1 %v276_v37  ;;  %v307_v35 = vld [vmem:[%s2091_s26 + $0x328] sm:$0xff]  ;;  %v244_v36 = vld [vmem:[%s2091_s26 + $0x130] sm:$0xff] }
  0x82   : > { %v308_v37 = vld [vmem:[%s2091_s26 + $0x330] sm:$0xff] }
  0x84   : > { %1492 = vmatmul.mubr.f32.gmra.mrb[6].mxu0 %v213_v38  ;;  %1588 = vmatmul.mubr.f32.gmra.mrb[6].mxu1 %v277_v39  ;;  %v245_v38 = vld [vmem:[%s2091_s26 + $0x138] sm:$0xff] }
  0x85   : > { %1494 = vmatprep.mubr.f32.mxu0 %v214_v40  ;;  %1590 = vmatprep.mubr.f32.mxu1 %v278_v41  ;;  %v309_v39 = vld [vmem:[%s2091_s26 + $0x338] sm:$0xff]  ;;  %v246_v40 = vld [vmem:[%s2091_s26 + $0x140] sm:$0xff] }
  0x86   : > { %v310_v41 = vld [vmem:[%s2091_s26 + $0x340] sm:$0xff] }
  0x88   : > { %1495 = vmatmul.mubr.f32.gmra.mrb[8].mxu0 %v215_v42  ;;  %1591 = vmatmul.mubr.f32.gmra.mrb[8].mxu1 %v279_v43  ;;  %v247_v42 = vld [vmem:[%s2091_s26 + $0x148] sm:$0xff] }
  0x89   : > { %1497 = vmatprep.mubr.f32.mxu0 %v216_v44  ;;  %1593 = vmatprep.mubr.f32.mxu1 %v280_v45  ;;  %v311_v43 = vld [vmem:[%s2091_s26 + $0x348] sm:$0xff]  ;;  %v248_v44 = vld [vmem:[%s2091_s26 + $0x150] sm:$0xff] }
  0x8a   : > { %v312_v45 = vld [vmem:[%s2091_s26 + $0x350] sm:$0xff] }
  0x8c   : > { %1498 = vmatmul.mubr.f32.gmra.mrb[10].mxu0 %v217_v46  ;;  %1594 = vmatmul.mubr.f32.gmra.mrb[10].mxu1 %v281_v47  ;;  %v249_v46 = vld [vmem:[%s2091_s26 + $0x158] sm:$0xff] }
  0x8d   : > { %1500 = vmatprep.mubr.f32.mxu0 %v218_v48  ;;  %1596 = vmatprep.mubr.f32.mxu1 %v282_v49  ;;  %v313_v47 = vld [vmem:[%s2091_s26 + $0x358] sm:$0xff]  ;;  %v250_v48 = vld [vmem:[%s2091_s26 + $0x160] sm:$0xff] }
  0x8e   : > { %v314_v49 = vld [vmem:[%s2091_s26 + $0x360] sm:$0xff] }
  0x90   : > { %1501 = vmatmul.mubr.f32.gmra.mrb[12].mxu0 %v219_v50  ;;  %1597 = vmatmul.mubr.f32.gmra.mrb[12].mxu1 %v283_v51  ;;  %v251_v50 = vld [vmem:[%s2091_s26 + $0x168] sm:$0xff] }
  0x91   : > { %1503 = vmatprep.mubr.f32.mxu0 %v220_v52  ;;  %1599 = vmatprep.mubr.f32.mxu1 %v284_v53  ;;  %v315_v51 = vld [vmem:[%s2091_s26 + $0x368] sm:$0xff]  ;;  %v252_v52 = vld [vmem:[%s2091_s26 + $0x170] sm:$0xff] }
  0x92   : > { %v316_v53 = vld [vmem:[%s2091_s26 + $0x370] sm:$0xff] }
  0x94   : > { %1504 = vmatmul.mubr.f32.gmra.mrb[14].mxu0 %v221_v54  ;;  %1600 = vmatmul.mubr.f32.gmra.mrb[14].mxu1 %v285_v55  ;;  %v253_v54 = vld [vmem:[%s2091_s26 + $0x178] sm:$0xff] }
  0x95   : > { %1506 = vmatprep.mubr.f32.mxu0 %v222_v56  ;;  %1602 = vmatprep.mubr.f32.mxu1 %v286_v57  ;;  %v317_v55 = vld [vmem:[%s2091_s26 + $0x378] sm:$0xff]  ;;  %v254_v56 = vld [vmem:[%s2091_s26 + $0x180] sm:$0xff] }
  0x96   : > { %v318_v57 = vld [vmem:[%s2091_s26 + $0x380] sm:$0xff] }
  0x98   : > { %1507 = vmatmul.mubr.f32.gmra.mrb[16].mxu0 %v223_v58  ;;  %1603 = vmatmul.mubr.f32.gmra.mrb[16].mxu1 %v287_v59  ;;  %v255_v58 = vld [vmem:[%s2091_s26 + $0x188] sm:$0xff] }
  0x99   : > { %1509 = vmatprep.mubr.f32.mxu0 %v224_v60  ;;  %1605 = vmatprep.mubr.f32.mxu1 %v288_v61  ;;  %v319_v59 = vld [vmem:[%s2091_s26 + $0x388] sm:$0xff]  ;;  %v256_v60 = vld [vmem:[%s2091_s26 + $0x190] sm:$0xff] }
  0x9a   : > { %v320_v61 = vld [vmem:[%s2091_s26 + $0x390] sm:$0xff] }
  0x9c   : > { %1510 = vmatmul.mubr.f32.gmra.mrb[18].mxu0 %v225_v62  ;;  %1606 = vmatmul.mubr.f32.gmra.mrb[18].mxu1 %v289_v63  ;;  %v257_v62 = vld [vmem:[%s2091_s26 + $0x198] sm:$0xff] }
  0x9d   : > { %1512 = vmatprep.mubr.f32.mxu0 %v226_v0  ;;  %1608 = vmatprep.mubr.f32.mxu1 %v290_v1  ;;  %v321_v63 = vld [vmem:[%s2091_s26 + $0x398] sm:$0xff]  ;;  %v258_v0 = vld [vmem:[%s2091_s26 + $0x1a0] sm:$0xff] }
  0x9e   : > { %v322_v1 = vld [vmem:[%s2091_s26 + $0x3a0] sm:$0xff] }
  0xa0   : > { %1513 = vmatmul.mubr.f32.gmra.mrb[20].mxu0 %v227_v2  ;;  %1609 = vmatmul.mubr.f32.gmra.mrb[20].mxu1 %v291_v3  ;;  %v259_v2 = vld [vmem:[%s2091_s26 + $0x1a8] sm:$0xff] }
  0xa1   : > { %1515 = vmatprep.mubr.f32.mxu0 %v228_v4  ;;  %1611 = vmatprep.mubr.f32.mxu1 %v292_v5  ;;  %v323_v3 = vld [vmem:[%s2091_s26 + $0x3a8] sm:$0xff]  ;;  %v260_v4 = vld [vmem:[%s2091_s26 + $0x1b0] sm:$0xff] }
  0xa2   : > { %v324_v5 = vld [vmem:[%s2091_s26 + $0x3b0] sm:$0xff] }
  0xa4   : > { %1516 = vmatmul.mubr.f32.gmra.mrb[22].mxu0 %v229_v6  ;;  %1612 = vmatmul.mubr.f32.gmra.mrb[22].mxu1 %v293_v7  ;;  %v261_v6 = vld [vmem:[%s2091_s26 + $0x1b8] sm:$0xff] }
  0xa5   : > { %1518 = vmatprep.mubr.f32.mxu0 %v230_v8  ;;  %1614 = vmatprep.mubr.f32.mxu1 %v294_v9  ;;  %v325_v7 = vld [vmem:[%s2091_s26 + $0x3b8] sm:$0xff]  ;;  %v262_v8 = vld [vmem:[%s2091_s26 + $0x1c0] sm:$0xff] }
  0xa6   : > { %v326_v9 = vld [vmem:[%s2091_s26 + $0x3c0] sm:$0xff] }
  0xa8   : > { %1519 = vmatmul.mubr.f32.gmra.mrb[24].mxu0 %v231_v10  ;;  %1615 = vmatmul.mubr.f32.gmra.mrb[24].mxu1 %v295_v11  ;;  %v263_v10 = vld [vmem:[%s2091_s26 + $0x1c8] sm:$0xff] }
  0xa9   : > { %1521 = vmatprep.mubr.f32.mxu0 %v232_v12  ;;  %1617 = vmatprep.mubr.f32.mxu1 %v296_v13  ;;  %v327_v11 = vld [vmem:[%s2091_s26 + $0x3c8] sm:$0xff]  ;;  %v264_v12 = vld [vmem:[%s2091_s26 + $0x1d0] sm:$0xff] }
  0xaa   : > { %v328_v13 = vld [vmem:[%s2091_s26 + $0x3d0] sm:$0xff] }
  0xac   : > { %1522 = vmatmul.mubr.f32.gmra.mrb[26].mxu0 %v233_v14  ;;  %1618 = vmatmul.mubr.f32.gmra.mrb[26].mxu1 %v297_v15  ;;  %v265_v14 = vld [vmem:[%s2091_s26 + $0x1d8] sm:$0xff] }
  0xad   : > { %1524 = vmatprep.mubr.f32.mxu0 %v234_v16  ;;  %1620 = vmatprep.mubr.f32.mxu1 %v298_v17  ;;  %v329_v15 = vld [vmem:[%s2091_s26 + $0x3d8] sm:$0xff]  ;;  %v266_v16 = vld [vmem:[%s2091_s26 + $0x1e0] sm:$0xff] }
  0xae   : > { %v330_v17 = vld [vmem:[%s2091_s26 + $0x3e0] sm:$0xff] }
  0xb0   : > { %1525 = vmatmul.mubr.f32.gmra.mrb[28].mxu0 %v235_v18  ;;  %1621 = vmatmul.mubr.f32.gmra.mrb[28].mxu1 %v299_v19  ;;  %v267_v18 = vld [vmem:[%s2091_s26 + $0x1e8] sm:$0xff] }
  0xb1   : > { %1527 = vmatprep.mubr.f32.mxu0 %v236_v20  ;;  %1623 = vmatprep.mubr.f32.mxu1 %v300_v21  ;;  %v331_v19 = vld [vmem:[%s2091_s26 + $0x3e8] sm:$0xff]  ;;  %v268_v20 = vld [vmem:[%s2091_s26 + $0x1f0] sm:$0xff] }
  0xb2   : > { %v332_v21 = vld [vmem:[%s2091_s26 + $0x3f0] sm:$0xff] }
  0xb4   : > { %1528 = vmatmul.mubr.f32.gmra.mrb[30].mxu0 %v237_v22  ;;  %1624 = vmatmul.mubr.f32.gmra.mrb[30].mxu1 %v301_v23  ;;  %v269_v22 = vld [vmem:[%s2091_s26 + $0x1f8] sm:$0xff] }
  0xb5   : > { %1530 = vmatprep.mubr.f32.mxu0 %v238_v24  ;;  %1626 = vmatprep.mubr.f32.mxu1 %v302_v25  ;;  %v333_v23 = vld [vmem:[%s2091_s26 + $0x3f8] sm:$0xff]  ;;  %v2232_v24 = vld [vmem:[%s2547_s2] ss:$0 sm:$0xff] }
  0xb8   : > { %1531 = vmatmul.mubr.f32.gmra.mrb[32].mxu0 %v239_v26  ;;  %1627 = vmatmul.mubr.f32.gmra.mrb[32].mxu1 %v303_v27 }
  0xb9   : > { %1533 = vmatprep.mubr.f32.mxu0 %v240_v28  ;;  %1629 = vmatprep.mubr.f32.mxu1 %v304_v29 }
  0xbc   : > { %1534 = vmatmul.mubr.f32.gmra.mrb[34].mxu0 %v241_v30  ;;  %1630 = vmatmul.mubr.f32.gmra.mrb[34].mxu1 %v305_v31 }
  0xbd   : > { %1536 = vmatprep.mubr.f32.mxu0 %v242_v32  ;;  %1632 = vmatprep.mubr.f32.mxu1 %v306_v33 }
  0xc0   : > { %1537 = vmatmul.mubr.f32.gmra.mrb[36].mxu0 %v243_v34  ;;  %1633 = vmatmul.mubr.f32.gmra.mrb[36].mxu1 %v307_v35 }
  0xc1   : > { %1539 = vmatprep.mubr.f32.mxu0 %v244_v36  ;;  %1635 = vmatprep.mubr.f32.mxu1 %v308_v37 }
  0xc4   : > { %1540 = vmatmul.mubr.f32.gmra.mrb[38].mxu0 %v245_v38  ;;  %1636 = vmatmul.mubr.f32.gmra.mrb[38].mxu1 %v309_v39 }
  0xc5   : > { %1542 = vmatprep.mubr.f32.mxu0 %v246_v40  ;;  %1638 = vmatprep.mubr.f32.mxu1 %v310_v41 }
  0xc8   : > { %1543 = vmatmul.mubr.f32.gmra.mrb[40].mxu0 %v247_v42  ;;  %1639 = vmatmul.mubr.f32.gmra.mrb[40].mxu1 %v311_v43 }
  0xc9   : > { %1545 = vmatprep.mubr.f32.mxu0 %v248_v44  ;;  %1641 = vmatprep.mubr.f32.mxu1 %v312_v45 }
  0xcc   : > { %1546 = vmatmul.mubr.f32.gmra.mrb[42].mxu0 %v249_v46  ;;  %1642 = vmatmul.mubr.f32.gmra.mrb[42].mxu1 %v313_v47 }
  0xcd   : > { %1548 = vmatprep.mubr.f32.mxu0 %v250_v48  ;;  %1644 = vmatprep.mubr.f32.mxu1 %v314_v49 }
  0xd0   : > { %1549 = vmatmul.mubr.f32.gmra.mrb[44].mxu0 %v251_v50  ;;  %1645 = vmatmul.mubr.f32.gmra.mrb[44].mxu1 %v315_v51 }
  0xd1   : > { %1551 = vmatprep.mubr.f32.mxu0 %v252_v52  ;;  %1647 = vmatprep.mubr.f32.mxu1 %v316_v53 }
  0xd4   : > { %1552 = vmatmul.mubr.f32.gmra.mrb[46].mxu0 %v253_v54  ;;  %1648 = vmatmul.mubr.f32.gmra.mrb[46].mxu1 %v317_v55 }
  0xd5   : > { %1554 = vmatprep.mubr.f32.mxu0 %v254_v56  ;;  %1650 = vmatprep.mubr.f32.mxu1 %v318_v57 }
  0xd8   : > { %1555 = vmatmul.mubr.f32.gmra.mrb[48].mxu0 %v255_v58  ;;  %1651 = vmatmul.mubr.f32.gmra.mrb[48].mxu1 %v319_v59 }
  0xd9   : > { %1557 = vmatprep.mubr.f32.mxu0 %v256_v60  ;;  %1653 = vmatprep.mubr.f32.mxu1 %v320_v61 }
  0xdc   : > { %1558 = vmatmul.mubr.f32.gmra.mrb[50].mxu0 %v257_v62  ;;  %1654 = vmatmul.mubr.f32.gmra.mrb[50].mxu1 %v321_v63 }
  0xdd   : > { %1560 = vmatprep.mubr.f32.mxu0 %v258_v0  ;;  %1656 = vmatprep.mubr.f32.mxu1 %v322_v1 }
  0xe0   : > { %1561 = vmatmul.mubr.f32.gmra.mrb[52].mxu0 %v259_v2  ;;  %1657 = vmatmul.mubr.f32.gmra.mrb[52].mxu1 %v323_v3 }
  0xe1   : > { %1563 = vmatprep.mubr.f32.mxu0 %v260_v4  ;;  %1659 = vmatprep.mubr.f32.mxu1 %v324_v5 }
  0xe4   : > { %1564 = vmatmul.mubr.f32.gmra.mrb[54].mxu0 %v261_v6  ;;  %1660 = vmatmul.mubr.f32.gmra.mrb[54].mxu1 %v325_v7 }
  0xe5   : > { %1566 = vmatprep.mubr.f32.mxu0 %v262_v8  ;;  %1662 = vmatprep.mubr.f32.mxu1 %v326_v9 }
  0xe8   : > { %1567 = vmatmul.mubr.f32.gmra.mrb[56].mxu0 %v263_v10  ;;  %1663 = vmatmul.mubr.f32.gmra.mrb[56].mxu1 %v327_v11 }
  0xe9   : > { %1569 = vmatprep.mubr.f32.mxu0 %v264_v12  ;;  %1665 = vmatprep.mubr.f32.mxu1 %v328_v13 }
  0xec   : > { %1570 = vmatmul.mubr.f32.gmra.mrb[58].mxu0 %v265_v14  ;;  %1666 = vmatmul.mubr.f32.gmra.mrb[58].mxu1 %v329_v15 }
  0xed   : > { %1572 = vmatprep.mubr.f32.mxu0 %v266_v16  ;;  %1668 = vmatprep.mubr.f32.mxu1 %v330_v17 }
  0xf0   : > { %1573 = vmatmul.mubr.f32.gmra.mrb[60].mxu0 %v267_v18  ;;  %1669 = vmatmul.mubr.f32.gmra.mrb[60].mxu1 %v331_v19 }
  0xf1   : > { %1575 = vmatprep.mubr.f32.mxu0 %v268_v20  ;;  %1671 = vmatprep.mubr.f32.mxu1 %v332_v21 }
  0xf4   : > { %1576 = vmatmul.mubr.f32.gmra.mrb[62].mxu0 %v269_v22  ;;  %1672 = vmatmul.mubr.f32.gmra.mrb[62].mxu1 %v333_v23 }
 0x14b   : > { %v1484_v25 = vpop.f32.mrb[0].mxu0  ;;  %v1580_v26 = vpop.f32.mrb[0].mxu1 }
 0x14c   : > { %v429_v27 = vadd.f32 %v1484_v25, %v2232_v24  ;;  %v749_v28 = vadd.f32 %v1580_v26, %v2232_v24  ;;  %v423_v29 = vpop.f32.mrb[1].mxu0  ;;  %v743_v30 = vpop.f32.mrb[1].mxu1 }
 0x14d   : > { %v424_v31 = vadd.f32 %v2232_v24, %v423_v29  ;;  %v744_v32 = vadd.f32 %v2232_v24, %v743_v30 }
 0x14e   : > { %1063 = vst [vmem:[%s2240_s8 + $0x8] sm:$0xff] %v429_v27  ;;  %1127 = vst [vmem:[%s2240_s8 + $0x208] sm:$0xff] %v749_v28 }
 0x14f   : > { %1062 = vst [vmem:[%s2240_s8] sm:$0xff] %v424_v31  ;;  %1126 = vst [vmem:[%s2240_s8 + $0x200] sm:$0xff] %v744_v32  ;;  %v1487_v33 = vpop.f32.mrb[2].mxu0  ;;  %v1583_v34 = vpop.f32.mrb[2].mxu1 }
 0x150   : > { %v439_v35 = vadd.f32 %v1487_v33, %v2232_v24  ;;  %v759_v36 = vadd.f32 %v1583_v34, %v2232_v24  ;;  %v433_v37 = vpop.f32.mrb[3].mxu0  ;;  %v753_v38 = vpop.f32.mrb[3].mxu1 }
 0x151   : > { %v434_v39 = vadd.f32 %v2232_v24, %v433_v37  ;;  %v754_v40 = vadd.f32 %v2232_v24, %v753_v38 }
 0x152   : > { %1065 = vst [vmem:[%s2240_s8 + $0x18] sm:$0xff] %v439_v35  ;;  %1129 = vst [vmem:[%s2240_s8 + $0x218] sm:$0xff] %v759_v36 }
 0x153   : > { %1064 = vst [vmem:[%s2240_s8 + $0x10] sm:$0xff] %v434_v39  ;;  %1128 = vst [vmem:[%s2240_s8 + $0x210] sm:$0xff] %v754_v40  ;;  %v1490_v41 = vpop.f32.mrb[4].mxu0  ;;  %v1586_v42 = vpop.f32.mrb[4].mxu1 }
 0x154   : > { %v449_v43 = vadd.f32 %v1490_v41, %v2232_v24  ;;  %v769_v44 = vadd.f32 %v1586_v42, %v2232_v24  ;;  %v443_v45 = vpop.f32.mrb[5].mxu0  ;;  %v763_v46 = vpop.f32.mrb[5].mxu1 }
 0x155   : > { %v444_v47 = vadd.f32 %v2232_v24, %v443_v45  ;;  %v764_v48 = vadd.f32 %v2232_v24, %v763_v46 }
 0x156   : > { %1067 = vst [vmem:[%s2240_s8 + $0x28] sm:$0xff] %v449_v43  ;;  %1131 = vst [vmem:[%s2240_s8 + $0x228] sm:$0xff] %v769_v44 }
 0x157   : > { %1066 = vst [vmem:[%s2240_s8 + $0x20] sm:$0xff] %v444_v47  ;;  %1130 = vst [vmem:[%s2240_s8 + $0x220] sm:$0xff] %v764_v48  ;;  %v1493_v49 = vpop.f32.mrb[6].mxu0  ;;  %v1589_v50 = vpop.f32.mrb[6].mxu1 }
 0x158   : > { %v459_v51 = vadd.f32 %v1493_v49, %v2232_v24  ;;  %v779_v52 = vadd.f32 %v1589_v50, %v2232_v24  ;;  %v453_v53 = vpop.f32.mrb[7].mxu0  ;;  %v773_v54 = vpop.f32.mrb[7].mxu1 }
 0x159   : > { %v454_v55 = vadd.f32 %v2232_v24, %v453_v53  ;;  %v774_v56 = vadd.f32 %v2232_v24, %v773_v54 }
 0x15a   : > { %1069 = vst [vmem:[%s2240_s8 + $0x38] sm:$0xff] %v459_v51  ;;  %1133 = vst [vmem:[%s2240_s8 + $0x238] sm:$0xff] %v779_v52 }
 0x15b   : > { %1068 = vst [vmem:[%s2240_s8 + $0x30] sm:$0xff] %v454_v55  ;;  %1132 = vst [vmem:[%s2240_s8 + $0x230] sm:$0xff] %v774_v56  ;;  %v1496_v57 = vpop.f32.mrb[8].mxu0  ;;  %v1592_v58 = vpop.f32.mrb[8].mxu1 }
 0x15c   : > { %v469_v59 = vadd.f32 %v1496_v57, %v2232_v24  ;;  %v789_v60 = vadd.f32 %v1592_v58, %v2232_v24  ;;  %v463_v61 = vpop.f32.mrb[9].mxu0  ;;  %v783_v62 = vpop.f32.mrb[9].mxu1 }
 0x15d   : > { %v464_v63 = vadd.f32 %v2232_v24, %v463_v61  ;;  %v784_v0 = vadd.f32 %v2232_v24, %v783_v62 }
 0x15e   : > { %1071 = vst [vmem:[%s2240_s8 + $0x48] sm:$0xff] %v469_v59  ;;  %1135 = vst [vmem:[%s2240_s8 + $0x248] sm:$0xff] %v789_v60 }
 0x15f   : > { %1070 = vst [vmem:[%s2240_s8 + $0x40] sm:$0xff] %v464_v63  ;;  %1134 = vst [vmem:[%s2240_s8 + $0x240] sm:$0xff] %v784_v0  ;;  %v1499_v1 = vpop.f32.mrb[10].mxu0  ;;  %v1595_v2 = vpop.f32.mrb[10].mxu1 }
 0x160   : > { %v479_v3 = vadd.f32 %v1499_v1, %v2232_v24  ;;  %v799_v4 = vadd.f32 %v1595_v2, %v2232_v24  ;;  %v473_v5 = vpop.f32.mrb[11].mxu0  ;;  %v793_v6 = vpop.f32.mrb[11].mxu1 }
 0x161   : > { %v474_v7 = vadd.f32 %v2232_v24, %v473_v5  ;;  %v794_v8 = vadd.f32 %v2232_v24, %v793_v6 }
 0x162   : > { %1073 = vst [vmem:[%s2240_s8 + $0x58] sm:$0xff] %v479_v3  ;;  %1137 = vst [vmem:[%s2240_s8 + $0x258] sm:$0xff] %v799_v4 }
 0x163   : > { %1072 = vst [vmem:[%s2240_s8 + $0x50] sm:$0xff] %v474_v7  ;;  %1136 = vst [vmem:[%s2240_s8 + $0x250] sm:$0xff] %v794_v8  ;;  %v1502_v9 = vpop.f32.mrb[12].mxu0  ;;  %v1598_v10 = vpop.f32.mrb[12].mxu1 }
 0x164   : > { %v489_v11 = vadd.f32 %v1502_v9, %v2232_v24  ;;  %v809_v12 = vadd.f32 %v1598_v10, %v2232_v24  ;;  %v483_v13 = vpop.f32.mrb[13].mxu0  ;;  %v803_v14 = vpop.f32.mrb[13].mxu1 }
 0x165   : > { %v484_v15 = vadd.f32 %v2232_v24, %v483_v13  ;;  %v804_v16 = vadd.f32 %v2232_v24, %v803_v14 }
 0x166   : > { %1075 = vst [vmem:[%s2240_s8 + $0x68] sm:$0xff] %v489_v11  ;;  %1139 = vst [vmem:[%s2240_s8 + $0x268] sm:$0xff] %v809_v12 }
 0x167   : > { %1074 = vst [vmem:[%s2240_s8 + $0x60] sm:$0xff] %v484_v15  ;;  %1138 = vst [vmem:[%s2240_s8 + $0x260] sm:$0xff] %v804_v16  ;;  %v1505_v17 = vpop.f32.mrb[14].mxu0  ;;  %v1601_v18 = vpop.f32.mrb[14].mxu1 }
 0x168   : > { %v499_v19 = vadd.f32 %v1505_v17, %v2232_v24  ;;  %v819_v20 = vadd.f32 %v1601_v18, %v2232_v24  ;;  %v493_v21 = vpop.f32.mrb[15].mxu0  ;;  %v813_v22 = vpop.f32.mrb[15].mxu1 }
 0x169   : > { %v494_v23 = vadd.f32 %v2232_v24, %v493_v21  ;;  %v814_v25 = vadd.f32 %v2232_v24, %v813_v22 }
 0x16a   : > { %1077 = vst [vmem:[%s2240_s8 + $0x78] sm:$0xff] %v499_v19  ;;  %1141 = vst [vmem:[%s2240_s8 + $0x278] sm:$0xff] %v819_v20 }
 0x16b   : > { %1076 = vst [vmem:[%s2240_s8 + $0x70] sm:$0xff] %v494_v23  ;;  %1140 = vst [vmem:[%s2240_s8 + $0x270] sm:$0xff] %v814_v25  ;;  %v1508_v26 = vpop.f32.mrb[16].mxu0  ;;  %v1604_v27 = vpop.f32.mrb[16].mxu1 }
 0x16c   : > { %v509_v28 = vadd.f32 %v1508_v26, %v2232_v24  ;;  %v829_v29 = vadd.f32 %v1604_v27, %v2232_v24  ;;  %v503_v30 = vpop.f32.mrb[17].mxu0  ;;  %v823_v31 = vpop.f32.mrb[17].mxu1 }
 0x16d   : > { %v504_v32 = vadd.f32 %v2232_v24, %v503_v30  ;;  %v824_v33 = vadd.f32 %v2232_v24, %v823_v31 }
 0x16e   : > { %1079 = vst [vmem:[%s2240_s8 + $0x88] sm:$0xff] %v509_v28  ;;  %1143 = vst [vmem:[%s2240_s8 + $0x288] sm:$0xff] %v829_v29 }
 0x16f   : > { %1078 = vst [vmem:[%s2240_s8 + $0x80] sm:$0xff] %v504_v32  ;;  %1142 = vst [vmem:[%s2240_s8 + $0x280] sm:$0xff] %v824_v33  ;;  %v1511_v34 = vpop.f32.mrb[18].mxu0  ;;  %v1607_v35 = vpop.f32.mrb[18].mxu1 }
 0x170   : > { %v519_v36 = vadd.f32 %v1511_v34, %v2232_v24  ;;  %v839_v37 = vadd.f32 %v1607_v35, %v2232_v24  ;;  %v513_v38 = vpop.f32.mrb[19].mxu0  ;;  %v833_v39 = vpop.f32.mrb[19].mxu1 }
 0x171   : > { %v514_v40 = vadd.f32 %v2232_v24, %v513_v38  ;;  %v834_v41 = vadd.f32 %v2232_v24, %v833_v39 }
 0x172   : > { %1081 = vst [vmem:[%s2240_s8 + $0x98] sm:$0xff] %v519_v36  ;;  %1145 = vst [vmem:[%s2240_s8 + $0x298] sm:$0xff] %v839_v37 }
 0x173   : > { %1080 = vst [vmem:[%s2240_s8 + $0x90] sm:$0xff] %v514_v40  ;;  %1144 = vst [vmem:[%s2240_s8 + $0x290] sm:$0xff] %v834_v41  ;;  %v1514_v42 = vpop.f32.mrb[20].mxu0  ;;  %v1610_v43 = vpop.f32.mrb[20].mxu1 }
 0x174   : > { %v529_v44 = vadd.f32 %v1514_v42, %v2232_v24  ;;  %v849_v45 = vadd.f32 %v1610_v43, %v2232_v24  ;;  %v523_v46 = vpop.f32.mrb[21].mxu0  ;;  %v843_v47 = vpop.f32.mrb[21].mxu1 }
 0x175   : > { %v524_v48 = vadd.f32 %v2232_v24, %v523_v46  ;;  %v844_v49 = vadd.f32 %v2232_v24, %v843_v47 }
 0x176   : > { %1083 = vst [vmem:[%s2240_s8 + $0xa8] sm:$0xff] %v529_v44  ;;  %1147 = vst [vmem:[%s2240_s8 + $0x2a8] sm:$0xff] %v849_v45 }
 0x177   : > { %1082 = vst [vmem:[%s2240_s8 + $0xa0] sm:$0xff] %v524_v48  ;;  %1146 = vst [vmem:[%s2240_s8 + $0x2a0] sm:$0xff] %v844_v49  ;;  %v1517_v50 = vpop.f32.mrb[22].mxu0  ;;  %v1613_v51 = vpop.f32.mrb[22].mxu1 }
 0x178   : > { %v539_v52 = vadd.f32 %v1517_v50, %v2232_v24  ;;  %v859_v53 = vadd.f32 %v1613_v51, %v2232_v24  ;;  %v533_v54 = vpop.f32.mrb[23].mxu0  ;;  %v853_v55 = vpop.f32.mrb[23].mxu1 }
 0x179   : > { %v534_v56 = vadd.f32 %v2232_v24, %v533_v54  ;;  %v854_v57 = vadd.f32 %v2232_v24, %v853_v55 }
 0x17a   : > { %1085 = vst [vmem:[%s2240_s8 + $0xb8] sm:$0xff] %v539_v52  ;;  %1149 = vst [vmem:[%s2240_s8 + $0x2b8] sm:$0xff] %v859_v53 }
 0x17b   : > { %1084 = vst [vmem:[%s2240_s8 + $0xb0] sm:$0xff] %v534_v56  ;;  %1148 = vst [vmem:[%s2240_s8 + $0x2b0] sm:$0xff] %v854_v57  ;;  %v1520_v58 = vpop.f32.mrb[24].mxu0  ;;  %v1616_v59 = vpop.f32.mrb[24].mxu1 }
 0x17c   : > { %v549_v60 = vadd.f32 %v1520_v58, %v2232_v24  ;;  %v869_v61 = vadd.f32 %v1616_v59, %v2232_v24  ;;  %v543_v62 = vpop.f32.mrb[25].mxu0  ;;  %v863_v63 = vpop.f32.mrb[25].mxu1 }
 0x17d   : > { %v544_v0 = vadd.f32 %v2232_v24, %v543_v62  ;;  %v864_v1 = vadd.f32 %v2232_v24, %v863_v63 }
 0x17e   : > { %1087 = vst [vmem:[%s2240_s8 + $0xc8] sm:$0xff] %v549_v60  ;;  %1151 = vst [vmem:[%s2240_s8 + $0x2c8] sm:$0xff] %v869_v61 }
 0x17f   : > { %1086 = vst [vmem:[%s2240_s8 + $0xc0] sm:$0xff] %v544_v0  ;;  %1150 = vst [vmem:[%s2240_s8 + $0x2c0] sm:$0xff] %v864_v1  ;;  %v1523_v2 = vpop.f32.mrb[26].mxu0  ;;  %v1619_v3 = vpop.f32.mrb[26].mxu1 }
 0x180   : > { %v559_v4 = vadd.f32 %v1523_v2, %v2232_v24  ;;  %v879_v5 = vadd.f32 %v1619_v3, %v2232_v24  ;;  %v553_v6 = vpop.f32.mrb[27].mxu0  ;;  %v873_v7 = vpop.f32.mrb[27].mxu1 }
 0x181   : > { %v554_v8 = vadd.f32 %v2232_v24, %v553_v6  ;;  %v874_v9 = vadd.f32 %v2232_v24, %v873_v7 }
 0x182   : > { %1089 = vst [vmem:[%s2240_s8 + $0xd8] sm:$0xff] %v559_v4  ;;  %1153 = vst [vmem:[%s2240_s8 + $0x2d8] sm:$0xff] %v879_v5 }
 0x183   : > { %1088 = vst [vmem:[%s2240_s8 + $0xd0] sm:$0xff] %v554_v8  ;;  %1152 = vst [vmem:[%s2240_s8 + $0x2d0] sm:$0xff] %v874_v9  ;;  %v1526_v10 = vpop.f32.mrb[28].mxu0  ;;  %v1622_v11 = vpop.f32.mrb[28].mxu1 }
 0x184   : > { %v569_v12 = vadd.f32 %v1526_v10, %v2232_v24  ;;  %v889_v13 = vadd.f32 %v1622_v11, %v2232_v24  ;;  %v563_v14 = vpop.f32.mrb[29].mxu0  ;;  %v883_v15 = vpop.f32.mrb[29].mxu1 }
 0x185   : > { %v564_v16 = vadd.f32 %v2232_v24, %v563_v14  ;;  %v884_v17 = vadd.f32 %v2232_v24, %v883_v15 }
 0x186   : > { %1091 = vst [vmem:[%s2240_s8 + $0xe8] sm:$0xff] %v569_v12  ;;  %1155 = vst [vmem:[%s2240_s8 + $0x2e8] sm:$0xff] %v889_v13 }
 0x187   : > { %1090 = vst [vmem:[%s2240_s8 + $0xe0] sm:$0xff] %v564_v16  ;;  %1154 = vst [vmem:[%s2240_s8 + $0x2e0] sm:$0xff] %v884_v17  ;;  %v1529_v18 = vpop.f32.mrb[30].mxu0  ;;  %v1625_v19 = vpop.f32.mrb[30].mxu1 }
 0x188   : > { %v579_v20 = vadd.f32 %v1529_v18, %v2232_v24  ;;  %v899_v21 = vadd.f32 %v1625_v19, %v2232_v24  ;;  %v573_v22 = vpop.f32.mrb[31].mxu0  ;;  %v893_v23 = vpop.f32.mrb[31].mxu1 }
 0x189   : > { %v574_v25 = vadd.f32 %v2232_v24, %v573_v22  ;;  %v894_v26 = vadd.f32 %v2232_v24, %v893_v23 }
 0x18a   : > { %1093 = vst [vmem:[%s2240_s8 + $0xf8] sm:$0xff] %v579_v20  ;;  %1157 = vst [vmem:[%s2240_s8 + $0x2f8] sm:$0xff] %v899_v21 }
 0x18b   : > { %1092 = vst [vmem:[%s2240_s8 + $0xf0] sm:$0xff] %v574_v25  ;;  %1156 = vst [vmem:[%s2240_s8 + $0x2f0] sm:$0xff] %v894_v26  ;;  %v1532_v27 = vpop.f32.mrb[32].mxu0  ;;  %v1628_v28 = vpop.f32.mrb[32].mxu1 }
 0x18c   : > { %v589_v29 = vadd.f32 %v1532_v27, %v2232_v24  ;;  %v909_v30 = vadd.f32 %v1628_v28, %v2232_v24  ;;  %v583_v31 = vpop.f32.mrb[33].mxu0  ;;  %v903_v32 = vpop.f32.mrb[33].mxu1 }
 0x18d   : > { %v584_v33 = vadd.f32 %v2232_v24, %v583_v31  ;;  %v904_v34 = vadd.f32 %v2232_v24, %v903_v32 }
 0x18e   : > { %1095 = vst [vmem:[%s2240_s8 + $0x108] sm:$0xff] %v589_v29  ;;  %1159 = vst [vmem:[%s2240_s8 + $0x308] sm:$0xff] %v909_v30 }
 0x18f   : > { %1094 = vst [vmem:[%s2240_s8 + $0x100] sm:$0xff] %v584_v33  ;;  %1158 = vst [vmem:[%s2240_s8 + $0x300] sm:$0xff] %v904_v34  ;;  %v1535_v35 = vpop.f32.mrb[34].mxu0  ;;  %v1631_v36 = vpop.f32.mrb[34].mxu1 }
 0x190   : > { %v599_v37 = vadd.f32 %v1535_v35, %v2232_v24  ;;  %v919_v38 = vadd.f32 %v1631_v36, %v2232_v24  ;;  %v593_v39 = vpop.f32.mrb[35].mxu0  ;;  %v913_v40 = vpop.f32.mrb[35].mxu1 }
 0x191   : > { %v594_v41 = vadd.f32 %v2232_v24, %v593_v39  ;;  %v914_v42 = vadd.f32 %v2232_v24, %v913_v40 }
 0x192   : > { %1097 = vst [vmem:[%s2240_s8 + $0x118] sm:$0xff] %v599_v37  ;;  %1161 = vst [vmem:[%s2240_s8 + $0x318] sm:$0xff] %v919_v38 }
 0x193   : > { %1096 = vst [vmem:[%s2240_s8 + $0x110] sm:$0xff] %v594_v41  ;;  %1160 = vst [vmem:[%s2240_s8 + $0x310] sm:$0xff] %v914_v42  ;;  %v1538_v43 = vpop.f32.mrb[36].mxu0  ;;  %v1634_v44 = vpop.f32.mrb[36].mxu1 }
 0x194   : > { %v609_v45 = vadd.f32 %v1538_v43, %v2232_v24  ;;  %v929_v46 = vadd.f32 %v1634_v44, %v2232_v24  ;;  %v603_v47 = vpop.f32.mrb[37].mxu0  ;;  %v923_v48 = vpop.f32.mrb[37].mxu1 }
 0x195   : > { %v604_v49 = vadd.f32 %v2232_v24, %v603_v47  ;;  %v924_v50 = vadd.f32 %v2232_v24, %v923_v48 }
 0x196   : > { %1099 = vst [vmem:[%s2240_s8 + $0x128] sm:$0xff] %v609_v45  ;;  %1163 = vst [vmem:[%s2240_s8 + $0x328] sm:$0xff] %v929_v46 }
 0x197   : > { %1098 = vst [vmem:[%s2240_s8 + $0x120] sm:$0xff] %v604_v49  ;;  %1162 = vst [vmem:[%s2240_s8 + $0x320] sm:$0xff] %v924_v50  ;;  %v1541_v51 = vpop.f32.mrb[38].mxu0  ;;  %v1637_v52 = vpop.f32.mrb[38].mxu1 }
 0x198   : > { %v619_v53 = vadd.f32 %v1541_v51, %v2232_v24  ;;  %v939_v54 = vadd.f32 %v1637_v52, %v2232_v24  ;;  %v613_v55 = vpop.f32.mrb[39].mxu0  ;;  %v933_v56 = vpop.f32.mrb[39].mxu1 }
 0x199   : > { %v614_v57 = vadd.f32 %v2232_v24, %v613_v55  ;;  %v934_v58 = vadd.f32 %v2232_v24, %v933_v56 }
 0x19a   : > { %1101 = vst [vmem:[%s2240_s8 + $0x138] sm:$0xff] %v619_v53  ;;  %1165 = vst [vmem:[%s2240_s8 + $0x338] sm:$0xff] %v939_v54 }
 0x19b   : > { %1100 = vst [vmem:[%s2240_s8 + $0x130] sm:$0xff] %v614_v57  ;;  %1164 = vst [vmem:[%s2240_s8 + $0x330] sm:$0xff] %v934_v58  ;;  %v1544_v59 = vpop.f32.mrb[40].mxu0  ;;  %v1640_v60 = vpop.f32.mrb[40].mxu1 }
 0x19c   : > { %v629_v61 = vadd.f32 %v1544_v59, %v2232_v24  ;;  %v949_v62 = vadd.f32 %v1640_v60, %v2232_v24  ;;  %v623_v63 = vpop.f32.mrb[41].mxu0  ;;  %v943_v0 = vpop.f32.mrb[41].mxu1 }
 0x19d   : > { %v624_v1 = vadd.f32 %v2232_v24, %v623_v63  ;;  %v944_v2 = vadd.f32 %v2232_v24, %v943_v0 }
 0x19e   : > { %1103 = vst [vmem:[%s2240_s8 + $0x148] sm:$0xff] %v629_v61  ;;  %1167 = vst [vmem:[%s2240_s8 + $0x348] sm:$0xff] %v949_v62 }
 0x19f   : > { %1102 = vst [vmem:[%s2240_s8 + $0x140] sm:$0xff] %v624_v1  ;;  %1166 = vst [vmem:[%s2240_s8 + $0x340] sm:$0xff] %v944_v2  ;;  %v1547_v3 = vpop.f32.mrb[42].mxu0  ;;  %v1643_v4 = vpop.f32.mrb[42].mxu1 }
 0x1a0   : > { %v639_v5 = vadd.f32 %v1547_v3, %v2232_v24  ;;  %v959_v6 = vadd.f32 %v1643_v4, %v2232_v24  ;;  %v633_v7 = vpop.f32.mrb[43].mxu0  ;;  %v953_v8 = vpop.f32.mrb[43].mxu1 }
 0x1a1   : > { %v634_v9 = vadd.f32 %v2232_v24, %v633_v7  ;;  %v954_v10 = vadd.f32 %v2232_v24, %v953_v8 }
 0x1a2   : > { %1105 = vst [vmem:[%s2240_s8 + $0x158] sm:$0xff] %v639_v5  ;;  %1169 = vst [vmem:[%s2240_s8 + $0x358] sm:$0xff] %v959_v6 }
 0x1a3   : > { %1104 = vst [vmem:[%s2240_s8 + $0x150] sm:$0xff] %v634_v9  ;;  %1168 = vst [vmem:[%s2240_s8 + $0x350] sm:$0xff] %v954_v10  ;;  %v1550_v11 = vpop.f32.mrb[44].mxu0  ;;  %v1646_v12 = vpop.f32.mrb[44].mxu1 }
 0x1a4   : > { %v649_v13 = vadd.f32 %v1550_v11, %v2232_v24  ;;  %v969_v14 = vadd.f32 %v1646_v12, %v2232_v24  ;;  %v643_v15 = vpop.f32.mrb[45].mxu0  ;;  %v963_v16 = vpop.f32.mrb[45].mxu1 }
 0x1a5   : > { %v644_v17 = vadd.f32 %v2232_v24, %v643_v15  ;;  %v964_v18 = vadd.f32 %v2232_v24, %v963_v16 }
 0x1a6   : > { %1107 = vst [vmem:[%s2240_s8 + $0x168] sm:$0xff] %v649_v13  ;;  %1171 = vst [vmem:[%s2240_s8 + $0x368] sm:$0xff] %v969_v14 }
 0x1a7   : > { %1106 = vst [vmem:[%s2240_s8 + $0x160] sm:$0xff] %v644_v17  ;;  %1170 = vst [vmem:[%s2240_s8 + $0x360] sm:$0xff] %v964_v18  ;;  %v1553_v19 = vpop.f32.mrb[46].mxu0  ;;  %v1649_v20 = vpop.f32.mrb[46].mxu1 }
 0x1a8   : > { %v659_v21 = vadd.f32 %v1553_v19, %v2232_v24  ;;  %v979_v22 = vadd.f32 %v1649_v20, %v2232_v24  ;;  %v653_v23 = vpop.f32.mrb[47].mxu0  ;;  %v973_v25 = vpop.f32.mrb[47].mxu1 }
 0x1a9   : > { %v654_v26 = vadd.f32 %v2232_v24, %v653_v23  ;;  %v974_v27 = vadd.f32 %v2232_v24, %v973_v25 }
 0x1aa   : > { %1109 = vst [vmem:[%s2240_s8 + $0x178] sm:$0xff] %v659_v21  ;;  %1173 = vst [vmem:[%s2240_s8 + $0x378] sm:$0xff] %v979_v22 }
 0x1ab   : > { %1108 = vst [vmem:[%s2240_s8 + $0x170] sm:$0xff] %v654_v26  ;;  %1172 = vst [vmem:[%s2240_s8 + $0x370] sm:$0xff] %v974_v27  ;;  %v1556_v28 = vpop.f32.mrb[48].mxu0  ;;  %v1652_v29 = vpop.f32.mrb[48].mxu1 }
 0x1ac   : > { %v669_v30 = vadd.f32 %v1556_v28, %v2232_v24  ;;  %v989_v31 = vadd.f32 %v1652_v29, %v2232_v24  ;;  %v663_v32 = vpop.f32.mrb[49].mxu0  ;;  %v983_v33 = vpop.f32.mrb[49].mxu1 }
 0x1ad   : > { %v664_v34 = vadd.f32 %v2232_v24, %v663_v32  ;;  %v984_v35 = vadd.f32 %v2232_v24, %v983_v33 }
 0x1ae   : > { %1111 = vst [vmem:[%s2240_s8 + $0x188] sm:$0xff] %v669_v30  ;;  %1175 = vst [vmem:[%s2240_s8 + $0x388] sm:$0xff] %v989_v31 }
 0x1af   : > { %1110 = vst [vmem:[%s2240_s8 + $0x180] sm:$0xff] %v664_v34  ;;  %1174 = vst [vmem:[%s2240_s8 + $0x380] sm:$0xff] %v984_v35  ;;  %v1559_v36 = vpop.f32.mrb[50].mxu0  ;;  %v1655_v37 = vpop.f32.mrb[50].mxu1 }
 0x1b0   : > { %v679_v38 = vadd.f32 %v1559_v36, %v2232_v24  ;;  %v999_v39 = vadd.f32 %v1655_v37, %v2232_v24  ;;  %v673_v40 = vpop.f32.mrb[51].mxu0  ;;  %v993_v41 = vpop.f32.mrb[51].mxu1 }
 0x1b1   : > { %v674_v42 = vadd.f32 %v2232_v24, %v673_v40  ;;  %v994_v43 = vadd.f32 %v2232_v24, %v993_v41 }
 0x1b2   : > { %1113 = vst [vmem:[%s2240_s8 + $0x198] sm:$0xff] %v679_v38  ;;  %1177 = vst [vmem:[%s2240_s8 + $0x398] sm:$0xff] %v999_v39 }
 0x1b3   : > { %1112 = vst [vmem:[%s2240_s8 + $0x190] sm:$0xff] %v674_v42  ;;  %1176 = vst [vmem:[%s2240_s8 + $0x390] sm:$0xff] %v994_v43  ;;  %v1562_v44 = vpop.f32.mrb[52].mxu0  ;;  %v1658_v45 = vpop.f32.mrb[52].mxu1 }
 0x1b4   : > { %v689_v46 = vadd.f32 %v1562_v44, %v2232_v24  ;;  %v1009_v47 = vadd.f32 %v1658_v45, %v2232_v24  ;;  %v683_v48 = vpop.f32.mrb[53].mxu0  ;;  %v1003_v49 = vpop.f32.mrb[53].mxu1 }
 0x1b5   : > { %v684_v50 = vadd.f32 %v2232_v24, %v683_v48  ;;  %v1004_v51 = vadd.f32 %v2232_v24, %v1003_v49 }
 0x1b6   : > { %1115 = vst [vmem:[%s2240_s8 + $0x1a8] sm:$0xff] %v689_v46  ;;  %1179 = vst [vmem:[%s2240_s8 + $0x3a8] sm:$0xff] %v1009_v47 }
 0x1b7   : > { %1114 = vst [vmem:[%s2240_s8 + $0x1a0] sm:$0xff] %v684_v50  ;;  %1178 = vst [vmem:[%s2240_s8 + $0x3a0] sm:$0xff] %v1004_v51  ;;  %v1565_v52 = vpop.f32.mrb[54].mxu0  ;;  %v1661_v53 = vpop.f32.mrb[54].mxu1 }
 0x1b8   : > { %v699_v54 = vadd.f32 %v1565_v52, %v2232_v24  ;;  %v1019_v55 = vadd.f32 %v1661_v53, %v2232_v24  ;;  %v693_v56 = vpop.f32.mrb[55].mxu0  ;;  %v1013_v57 = vpop.f32.mrb[55].mxu1 }
 0x1b9   : > { %v694_v58 = vadd.f32 %v2232_v24, %v693_v56  ;;  %v1014_v59 = vadd.f32 %v2232_v24, %v1013_v57 }
 0x1ba   : > { %1117 = vst [vmem:[%s2240_s8 + $0x1b8] sm:$0xff] %v699_v54  ;;  %1181 = vst [vmem:[%s2240_s8 + $0x3b8] sm:$0xff] %v1019_v55 }
 0x1bb   : > { %1116 = vst [vmem:[%s2240_s8 + $0x1b0] sm:$0xff] %v694_v58  ;;  %1180 = vst [vmem:[%s2240_s8 + $0x3b0] sm:$0xff] %v1014_v59  ;;  %v1568_v60 = vpop.f32.mrb[56].mxu0  ;;  %v1664_v61 = vpop.f32.mrb[56].mxu1 }
 0x1bc   : > { %v709_v62 = vadd.f32 %v1568_v60, %v2232_v24  ;;  %v1029_v63 = vadd.f32 %v1664_v61, %v2232_v24  ;;  %v703_v0 = vpop.f32.mrb[57].mxu0  ;;  %v1023_v1 = vpop.f32.mrb[57].mxu1 }
 0x1bd   : > { %v704_v2 = vadd.f32 %v2232_v24, %v703_v0  ;;  %v1024_v3 = vadd.f32 %v2232_v24, %v1023_v1 }
 0x1be   : > { %1119 = vst [vmem:[%s2240_s8 + $0x1c8] sm:$0xff] %v709_v62  ;;  %1183 = vst [vmem:[%s2240_s8 + $0x3c8] sm:$0xff] %v1029_v63 }
 0x1bf   : > { %1118 = vst [vmem:[%s2240_s8 + $0x1c0] sm:$0xff] %v704_v2  ;;  %1182 = vst [vmem:[%s2240_s8 + $0x3c0] sm:$0xff] %v1024_v3  ;;  %v1571_v4 = vpop.f32.mrb[58].mxu0  ;;  %v1667_v5 = vpop.f32.mrb[58].mxu1 }
 0x1c0   : > { %v719_v6 = vadd.f32 %v1571_v4, %v2232_v24  ;;  %v1039_v7 = vadd.f32 %v1667_v5, %v2232_v24  ;;  %v713_v8 = vpop.f32.mrb[59].mxu0  ;;  %v1033_v9 = vpop.f32.mrb[59].mxu1 }
 0x1c1   : > { %v714_v10 = vadd.f32 %v2232_v24, %v713_v8  ;;  %v1034_v11 = vadd.f32 %v2232_v24, %v1033_v9 }
 0x1c2   : > { %1121 = vst [vmem:[%s2240_s8 + $0x1d8] sm:$0xff] %v719_v6  ;;  %1185 = vst [vmem:[%s2240_s8 + $0x3d8] sm:$0xff] %v1039_v7 }
 0x1c3   : > { %1120 = vst [vmem:[%s2240_s8 + $0x1d0] sm:$0xff] %v714_v10  ;;  %1184 = vst [vmem:[%s2240_s8 + $0x3d0] sm:$0xff] %v1034_v11  ;;  %v1574_v12 = vpop.f32.mrb[60].mxu0  ;;  %v1670_v13 = vpop.f32.mrb[60].mxu1 }
 0x1c4   : > { %v729_v14 = vadd.f32 %v1574_v12, %v2232_v24  ;;  %v1049_v15 = vadd.f32 %v1670_v13, %v2232_v24  ;;  %v723_v16 = vpop.f32.mrb[61].mxu0  ;;  %v1043_v17 = vpop.f32.mrb[61].mxu1 }
 0x1c5   : > { %v724_v18 = vadd.f32 %v2232_v24, %v723_v16  ;;  %v1044_v19 = vadd.f32 %v2232_v24, %v1043_v17 }
 0x1c6   : > { %1123 = vst [vmem:[%s2240_s8 + $0x1e8] sm:$0xff] %v729_v14  ;;  %1187 = vst [vmem:[%s2240_s8 + $0x3e8] sm:$0xff] %v1049_v15 }
 0x1c7   : > { %1122 = vst [vmem:[%s2240_s8 + $0x1e0] sm:$0xff] %v724_v18  ;;  %1186 = vst [vmem:[%s2240_s8 + $0x3e0] sm:$0xff] %v1044_v19  ;;  %v1577_v20 = vpop.f32.mrb[62].mxu0  ;;  %v1673_v21 = vpop.f32.mrb[62].mxu1 }
 0x1c8   : > { %v739_v22 = vadd.f32 %v1577_v20, %v2232_v24  ;;  %v1059_v23 = vadd.f32 %v1673_v21, %v2232_v24  ;;  %v733_v25 = vpop.f32.mrb[63].mxu0  ;;  %v1053_v26 = vpop.f32.mrb[63].mxu1 }
 0x1c9   : > { %v734_v27 = vadd.f32 %v2232_v24, %v733_v25  ;;  %v1054_v28 = vadd.f32 %v2232_v24, %v1053_v26 }
 0x1ca   : > { %1125 = vst [vmem:[%s2240_s8 + $0x1f8] sm:$0xff] %v739_v22  ;;  %1189 = vst [vmem:[%s2240_s8 + $0x3f8] sm:$0xff] %v1059_v23 }
 0x1cb   : > { %1124 = vst [vmem:[%s2240_s8 + $0x1f0] sm:$0xff] %v734_v27  ;;  %1188 = vst [vmem:[%s2240_s8 + $0x3f0] sm:$0xff] %v1054_v28 }
 0x1cc   : > { %1854 = shalt.err (!%p1851_p7)
}
 0x1cd   : > { %s1855_s30 = scalar_lea.hbm %s2493_s5, 16384  ;;  %s1859_s10 = scalar_lea.hbm %s2548_s3, 32768 }
 0x1ce   : > { %p1856_p9 = scmp.ne.s32.totalorder %s2493_s5, %s1855_s30  ;;  %p1860_p5 = scmp.lt.u32.totalorder %s2493_s5, %s2548_s3 }
 0x1cf   : > { %p1861_p11 = scmp.lt.u32.totalorder %s1859_s10, %s1855_s30  ;;  %p1863_p4 = scmp.lt.u32.totalorder %s1855_s30, %s2493_s5 }
 0x1d0   : > { %p1857_p1 = pnand %p1856_p9, %p2034_p12 }
 0x1d1   : > { %p1862_p2 = por %p1861_p11, %p1860_p5 }
 0x1d2   : > { %p1858_p0 = pneg %p1857_p1 }
 0x1d3   : > { %p1864_p6 = por %p1863_p4, %p1862_p2 }
 0x1d5   : > { %p1865_p8 = pnand %p1864_p6, %p1858_p0 }
 0x1d7   : > { %1868 = shalt.err (!%p1865_p8)
}
 0x1d8   : > { %s1918_s20 = smov 128   ;;  %s1919_s8 = smov 8  }
 0x1d9   : > { %1728 = dma.vmem_to_hbm [thread:$0]  (%p2034_p12), %s2495_s4, 16384, %s2493_s5, %s1191_s11, %s1918_s20, %s1918_s20, %s1919_s8  }
 0x1da PF: > { %s1219_s9 = sand.u32 1, %s1899_s12   ;;  %p2563_p10 = scmp.ne.s32.totalorder %s2553_s19, 0 }
 0x1db   : > { %p2564_p13 = scmp.ge.s32.totalorder %s1911_s15, 2  ;;  %s1220_s16 = scalar_lea.sflag [#allocation4], %s1219_s9 }
 0x1dd   : > { %p1739_p3 = pnand %p2564_p13, %p2563_p10 }
 0x1df   : > { %1894 = dma.done.wait (!%p1739_p3), %s1220_s16, 16384  }
 0x1e0   : > { %1896 = vsyncadd (!%p1739_p3), %s1220_s16, 4294950912  ;;  %p17_p7 = scmp.ge.s32.totalorder %s1996_s24, 4   ;;  %s2565_s12 = smov %s1903_s13 }
 0x1e1   : > { %s2566_s13 = smov %s1907_s14  ;;  %s2567_s14 = smov %s2030_s17 }
 0x1e2   : > { %s2568_s15 = smov %s1996_s24  ;;  %19 = sbr.rel (!%p17_p7) target bundleno = 6 (0x6), region = 81 }
 0x1e9   :  { %1225 = vsyncpa [#allocation3], 1 }
 0x1ea   :  { %1227 = vsyncpa [#allocation3 + $0x1], 1 }
 0x1eb   :  { %1228 = vsyncpa [#allocation6], 1 }
 0x1ec   :  { %1229 = vsyncpa [#allocation4], 1 }
 0x1ed   :  { %1231 = vsyncpa [#allocation4 + $0x1], 1 }

</bundles_post_ra>
